<compile_context>
chip_gen: v7x
topology: tpu7x:2x2x1
jax: 0.10.0
libtpu: 0.0.40
codegen_flags: <defaults>
</compile_context>

<pallas_src>
import functools

import jax
import jax.numpy as jnp
from jax.experimental import pallas as pl
from jax.experimental.pallas import tpu as pltpu

_LANE = 128
_MAX_UNROLL_CHUNKS = 32        # bound for the statically-unrolled lane-chunk loop
_CHUNKED_ACC_MAX_ROWS = 128    # keeps the (row_blk, 128) f32 accumulator <= 16 vregs


def _round_up(a: int, b: int) -> int:
    return ((a + b - 1) // b) * b


def _target_tile_bytes() -> int:
    """Per-tile byte target, gated per TPU generation (Pallas double-buffers it)."""
    try:
        info = pltpu.get_tpu_info()
        vmem = getattr(info, "vmem_capacity_bytes", None)
        if vmem is not None and vmem <= 64 * 1024 * 1024:
            # v7x-class: 64 MiB VMEM / ~3.2 TB/s HBM -> bigger tiles amortize the
            # ~0.35 us per-grid-step overhead; 2 x 8 MiB < 32 MiB scoped default.
            return 8 * 1024 * 1024
    except Exception:
        pass
    # v5e / v6e (and unknown): 2 x 4 MiB stays inside v5e's 16 MiB scoped default.
    return 4 * 1024 * 1024


def _choose_tiles(rows: int, s: int, itemsize: int, target_bytes: int):
    """Pick (row_blk, tile_s) aligned to (8*pack, 128), targeting ~target_bytes."""
    pack = max(1, 4 // itemsize)          # sublane packing: f32->1, bf16->2, int8->4
    base_rows = 8 * pack
    rows_ceil = _round_up(rows, base_rows)
    s_ceil = _round_up(s, _LANE)

    # 1) Moderate lane tile first (bounded so small row blocks can use the
    #    statically-unrolled VPU accumulation path).
    tile_s = min(s_ceil, _MAX_UNROLL_CHUNKS * _LANE)

    # 2) Grow the row block toward the byte target, bounded by the real row
    #    count, a scratch-friendly cap, and ">= 2 blocks on the parallel axis"
    #    whenever rows allow (v7x has 2 TensorCores).
    want_rows = (target_bytes // (tile_s * itemsize)) // base_rows * base_rows
    row_blk = max(base_rows, min(rows_ceil, want_rows, 4096))
    if rows_ceil >= 2 * base_rows:
        row_blk = min(row_blk, _round_up((rows + 1) // 2, base_rows))

    # 3) If rows ran out before the byte target (tiny N*C, huge D*H*W), grow the
    #    lane tile instead.
    if row_blk * tile_s * itemsize < target_bytes and tile_s < s_ceil:
        want_s = (target_bytes // (row_blk * itemsize)) // _LANE * _LANE
        tile_s = min(s_ceil, max(tile_s, want_s))

    return row_blk, tile_s


def _gap_kernel(x_ref, o_ref, acc_ref, *, tile_s, s_true, inv_s, needs_mask, chunked):
    """Row-wise mean over the tiled reduction (lane) axis with an f32 accumulator."""
    k = pl.program_id(1)

    @pl.when(k == 0)
    def _init():
        acc_ref[...] = jnp.zeros_like(acc_ref)

    if chunked:
        # Small row block: accumulate 128-lane slices with plain VPU adds into a
        # register-resident (row_blk, 128) f32 accumulator; the single cross-lane
        # (XLU) reduce happens only in the finalize step.
        acc = acc_ref[...]
        for c in range(tile_s // _LANE):
            chunk = x_ref[:, c * _LANE:(c + 1) * _LANE]
            if needs_mask:
                lane = jax.lax.broadcasted_iota(jnp.int32, chunk.shape, 1)
                valid = (k * tile_s + c * _LANE + lane) < s_true
                chunk = jnp.where(valid, chunk, jnp.zeros_like(chunk))
            acc = acc + chunk.astype(jnp.float32)
        acc_ref[...] = acc
    else:
        # Large row block: register-local row-wise reduce per step (one XLU
        # cross-lane reduce per 8-row group), f32-accumulated into (row_blk, 1).
        x = x_ref[...]
        if needs_mask:
            lane = jax.lax.broadcasted_iota(jnp.int32, x.shape, 1)
            x = jnp.where((k * tile_s + lane) < s_true, x, jnp.zeros_like(x))
        acc_ref[...] += jnp.sum(x, axis=-1, keepdims=True, dtype=jnp.float32)

    @pl.when(k == pl.num_programs(1) - 1)
    def _finalize():
        if chunked:
            row_sum = jnp.sum(acc_ref[...], axis=-1, keepdims=True)
        else:
            row_sum = acc_ref[...]
        o_ref[...] = (row_sum * inv_s).astype(o_ref.dtype)


def global_avg_pool3d(x):
    """x: (N, C, D, H, W) -> (N, C, 1, 1, 1); mean over D, H, W."""
    N, C, D, H, W = x.shape
    rows = N * C
    s = D * H * W
    itemsize = jnp.dtype(x.dtype).itemsize

    row_blk, tile_s = _choose_tiles(rows, s, itemsize, _target_tile_bytes())
    n_chunks = tile_s // _LANE
    chunked = (row_blk <= _CHUNKED_ACC_MAX_ROWS) and (n_chunks <= _MAX_UNROLL_CHUNKS)
    needs_mask = (s % tile_s) != 0        # ragged last reduction tile -> mask in-kernel
    grid = (pl.cdiv(rows, row_blk), pl.cdiv(s, tile_s))

    kernel = functools.partial(
        _gap_kernel, tile_s=tile_s, s_true=s, inv_s=float(1.0 / s),
        needs_mask=needs_mask, chunked=chunked)

    acc_shape = (row_blk, _LANE) if chunked else (row_blk, 1)

    out = pl.pallas_call(
        kernel,
        out_shape=jax.ShapeDtypeStruct((rows, 1), x.dtype),
        grid_spec=pltpu.PrefetchScalarGridSpec(
            num_scalar_prefetch=0,
            grid=grid,
            in_specs=[pl.BlockSpec((row_blk, tile_s), lambda i, k: (i, k))],
            out_specs=pl.BlockSpec((row_blk, 1), lambda i, k: (i, 0)),
            scratch_shapes=[pltpu.VMEM(acc_shape, jnp.float32)],
        ),
        compiler_params=pltpu.CompilerParams(
            dimension_semantics=("parallel", "arbitrary"),
        ),
        cost_estimate=pl.CostEstimate(
            flops=rows * s,
            transcendentals=0,
            bytes_accessed=rows * s * itemsize + rows * itemsize,
        ),
    )(x.reshape(rows, s))

    return out.reshape(N, C, 1, 1, 1)


if __name__ == "__main__":
    key = jax.random.PRNGKey(0)
    k0, k1 = jax.random.split(key)

    # Small shape consistent with the module: N=2, C=4, D=4, H=8, W=8 (S = 256).
    x = jax.random.normal(k0, (2, 4, 4, 8, 8), dtype=jnp.float32)
    y = jax.block_until_ready(global_avg_pool3d(x))
    ref = jnp.mean(x, axis=(2, 3, 4), keepdims=True)
    assert y.shape == (2, 4, 1, 1, 1), y.shape
    assert jnp.allclose(y, ref, atol=1e-5, rtol=1e-5)

    # Ragged shape (N*C and D*H*W not tile-aligned): exercises the in-kernel edge
    # masking and partial blocks that replaced the old jnp.pad copy.
    x2 = jax.random.normal(k1, (2, 3, 3, 5, 7), dtype=jnp.float32)
    y2 = jax.block_until_ready(global_avg_pool3d(x2))
    ref2 = jnp.mean(x2, axis=(2, 3, 4), keepdims=True)
    assert y2.shape == (2, 3, 1, 1, 1), y2.shape
    assert jnp.allclose(y2, ref2, atol=1e-5, rtol=1e-5)

    print("KERNEL_OK")
</pallas_src>

<mosaic_0001>
module attributes {stable_mosaic.version = 11 : i64} {
  func.func @_gap_kernel(%arg0: i32, %arg1: i32, %arg2: memref<8x256xf32, #tpu.memory_space<vmem>>, %arg3: memref<8x1xf32, #tpu.memory_space<vmem>>, %arg4: memref<8x128xf32, #tpu.memory_space<vmem>>) attributes {dimension_semantics = [#tpu.dimension_semantics<parallel>, #tpu.dimension_semantics<arbitrary>], iteration_bounds = array<i64: 1, 1>, scalar_prefetch = 0 : i64, scratch_operands = 1 : i64, tpu.core_type = #tpu.core_type<tc>, window_params = [{transform_indices = @transform_0, window_bounds = array<i64: 8, 256>}, {transform_indices = @transform_1, window_bounds = array<i64: 8, 1>}]} {
    %c0_i32 = arith.constant 0 : i32
    %0 = arith.cmpi eq, %arg1, %c0_i32 : i32
    %1 = arith.extui %0 : i1 to i32
    %c0_i32_0 = arith.constant 0 : i32
    %2 = arith.cmpi ne, %1, %c0_i32_0 : i32
    scf.if %2 {
      %cst = arith.constant 0.000000e+00 : f32
      %12 = vector.broadcast %cst : f32 to vector<8x128xf32>
      %c0_9 = arith.constant 0 : index
      %c0_10 = arith.constant 0 : index
      %13 = vector.load %arg4[%c0_9, %c0_10] : memref<8x128xf32, #tpu.memory_space<vmem>>, vector<8x128xf32>
      tpu.vector_store %arg4[%c0_9, %c0_10], %12 {strides = array<i32>} : memref<8x128xf32, #tpu.memory_space<vmem>>, vector<8x128xf32>,
    } else {
    }
    %c0 = arith.constant 0 : index
    %c0_1 = arith.constant 0 : index
    %3 = vector.load %arg4[%c0, %c0_1] : memref<8x128xf32, #tpu.memory_space<vmem>>, vector<8x128xf32>
    %c0_2 = arith.constant 0 : index
    %c0_3 = arith.constant 0 : index
    %4 = vector.load %arg2[%c0_2, %c0_3] : memref<8x256xf32, #tpu.memory_space<vmem>>, vector<8x128xf32>
    %5 = arith.addf %3, %4 : vector<8x128xf32>
    %c0_4 = arith.constant 0 : index
    %c128 = arith.constant 128 : index
    %6 = vector.load %arg2[%c0_4, %c128] : memref<8x256xf32, #tpu.memory_space<vmem>>, vector<8x128xf32>
    %7 = arith.addf %5, %6 : vector<8x128xf32>
    %c0_5 = arith.constant 0 : index
    %c0_6 = arith.constant 0 : index
    %8 = vector.load %arg4[%c0_5, %c0_6] : memref<8x128xf32, #tpu.memory_space<vmem>>, vector<8x128xf32>
    tpu.vector_store %arg4[%c0_5, %c0_6], %7 {strides = array<i32>} : memref<8x128xf32, #tpu.memory_space<vmem>>, vector<8x128xf32>,
    %c0_i32_7 = arith.constant 0 : i32
    %9 = arith.cmpi eq, %arg1, %c0_i32_7 : i32
    %10 = arith.extui %9 : i1 to i32
    %c0_i32_8 = arith.constant 0 : i32
    %11 = arith.cmpi ne, %10, %c0_i32_8 : i32
    scf.if %11 {
      %c0_9 = arith.constant 0 : index
      %c0_10 = arith.constant 0 : index
      %12 = vector.load %arg4[%c0_9, %c0_10] : memref<8x128xf32, #tpu.memory_space<vmem>>, vector<8x128xf32>
      %cst = arith.constant dense<0.000000e+00> : vector<8xf32>
      %13 = vector.multi_reduction <add>, %12, %cst [1] : vector<8x128xf32> to vector<8xf32>
      %14 = vector.shape_cast %13 : vector<8xf32> to vector<8x1xf32>
      %cst_11 = arith.constant 3.906250e-03 : f32
      %15 = vector.broadcast %cst_11 : f32 to vector<8x1xf32>
      %16 = arith.mulf %14, %15 : vector<8x1xf32>
      %c0_12 = arith.constant 0 : index
      %c0_13 = arith.constant 0 : index
      %17 = vector.load %arg3[%c0_12, %c0_13] : memref<8x1xf32, #tpu.memory_space<vmem>>, vector<8x1xf32>
      tpu.vector_store %arg3[%c0_12, %c0_13], %16 {strides = array<i32>} : memref<8x1xf32, #tpu.memory_space<vmem>>, vector<8x1xf32>,
    } else {
    }
    return
  }
  func.func @transform_0(%arg0: i32, %arg1: i32) -> (i32, i32) {
    %c0_i32 = arith.constant 0 : i32
    return %arg0, %arg1 : i32, i32
  }
  func.func @transform_1(%arg0: i32, %arg1: i32) -> (i32, i32) {
    %c0_i32 = arith.constant 0 : i32
    %c0_i32_0 = arith.constant 0 : i32
    return %arg0, %c0_i32 : i32, i32
  }
}

</mosaic_0001>

<bundles_post_ra>
// kernel: tpu_custom_call.1
= control target key start
LH: loop header
LB: loop body
LE: loop exit
PB: predicated region body
PF: predicated region fallthrough
CT: control target
= control target key end

     0   :  { %6 = vsyncpa [#allocation4], 0  ;;  %s70_s6 = smov [#allocation3]   ;;  %s96_s0 = inlined_call_operand.hbm [shape: f32[8,256], index: 0, kind: input, shape index: {}]   ;;  %s97_s1 = inlined_call_operand.vmem [shape: f32[8,1], index: 1, kind: output, shape index: {}]  }
   0x1   :  { %s13_s7 = sshll.u32 %s70_s6, 4  ;;  %s46_s10 = scalar_lea.hbm %s96_s0, 256  ;;  %s14_s7 = int_to_ptr.vmem [resolvable:$true] %s13_s7 }
   0x2   :  { %p47_p0 = scmp.ne.s32.totalorder %s96_s0, %s46_s10  ;;  %p50_p1 = scmp.lt.u32.totalorder %s46_s10, %s96_s0 }
   0x4   :  { %p52_p2 = pnand %p50_p1, %p47_p0 }
   0x6   :  { %55 = shalt.err (!%p52_p2)
}
   0x7   :  { %s56_s15 = scalar_lea.vmem %s14_s7, 256  ;;  %p61_p4 = scmp.lt.s32.totalorder %s14_s7, %s14_s7 }
   0x8   :  { %p57_p3 = scmp.ne.s32.totalorder %s14_s7, %s56_s15  ;;  %p62_p5 = scmp.lt.s32.totalorder %s56_s15, %s56_s15 }
   0xa   :  { %p63_p6 = por %p62_p5, %p61_p4 }
   0xc   :  { %p64_p7 = pnand %p63_p6, %p57_p3 }
   0xe   :  { %67 = shalt.err (!%p64_p7)
}
   0xf   :  { %16 = dma.hbm_to_vmem [thread:$0]  %s96_s0, 256, %s14_s7, [#allocation4]  }
  0x10   :  { %68 = dma.done.wait [#allocation4], 256  }
  0x11   :  { %69 = vsyncadd [#allocation4], 4294967040  ;;  %v26_v0 = vld [vmem:[#allocation3] sm:$0xff]  ;;  %v28_v1 = vld [vmem:[#allocation3 + $0x8] sm:$0xff]  ;;  %vm38_vm0 = vcmask 7168  }
  0x12   :  { %v29_v2 = vadd.f32 %v28_v1, %v26_v0 }
  0x14   :  { %35 = vadd.xlane.f32.xlu0 %v29_v2 }
  0xa1   :  { %v36_v3 = vpop.xlane.xlu0 %35 }
  0xa2   :  { %v37_v4 = vmul.f32 0.00390625, %v36_v3 }
  0xa4   :  { %39 = vst.msk [vmem:[%s97_s1] sm:$0xff] %vm38_vm0, %v37_v4 }
  0xa5   :  { %44 = vsyncpa [#allocation4], 1 }

</bundles_post_ra>
